<compile_context>
chip_gen: v7x
topology: tpu7x:2x2x1
jax: 0.10.0
libtpu: 0.0.40
codegen_flags: <defaults>
</compile_context>

<pallas_src>
import functools

import jax
import jax.numpy as jnp
from jax.experimental import pallas as pl
from jax.experimental.pallas import tpu as pltpu


_VPU_LAYER1_MAX_K = 8  # use VPU broadcast-mul-add path when noise_dim is tiny


def _ffnn_kernel(x_ref, w1_ref, b1_ref, w2_ref, b2_ref, w3_ref, b3_ref, o_ref):
    """Fused MLP: relu(relu(x @ W1 + b1) @ W2 + b2) @ W3 + b3 (W3 lane-padded)."""
    x = x_ref[...].astype(jnp.float32)          # (block_b, nd)
    nd = x.shape[1]
    w1 = w1_ref[...]                            # (nd, inner), f32

    # ---- Layer 1: Linear(noise_dim -> inner) + ReLU ----
    if nd <= _VPU_LAYER1_MAX_K:
        # K is tiny: a full systolic MXU pass would be ~empty and would
        # serialize ahead of the big matmul; do it on the (otherwise idle) VPU.
        h = x[:, 0:1] * w1[0:1, :]
        for k in range(1, nd):
            h = h + x[:, k:k + 1] * w1[k:k + 1, :]
    else:
        h = jnp.dot(x.astype(jnp.bfloat16), w1.astype(jnp.bfloat16),
                    preferred_element_type=jnp.float32)
    h = jnp.maximum(h + b1_ref[...], 0.0)       # f32 bias/ReLU

    # ---- Layer 2: Linear(inner -> inner) + ReLU (dominant matmul, MXU, bf16) ----
    h = jnp.dot(h.astype(jnp.bfloat16), w2_ref[...],
                preferred_element_type=jnp.float32)
    h = jnp.maximum(h + b2_ref[...], 0.0)

    # ---- Layer 3: Linear(inner -> padded noise_dim), lane-dense output ----
    y = jnp.dot(h.astype(jnp.bfloat16), w3_ref[...],
                preferred_element_type=jnp.float32) + b3_ref[...]
    o_ref[...] = y.astype(o_ref.dtype)


def _full_spec(shape):
    """Whole-array block, constant index map (stays VMEM-resident across grid)."""
    return pl.BlockSpec(shape, lambda i, _n=len(shape): (0,) * _n)


@functools.partial(jax.jit, static_argnames=("block_b",))
def basic_ffnn_forward(noise, params, *, block_b=512):
    """Run BasicFFNN forward with a fused Pallas kernel.

    noise:  (B, noise_dim) float32
    params: dict with w1 (noise_dim, inner), b1 (1, inner),
                      w2 (inner, inner),     b2 (1, inner),
                      w3 (inner, noise_dim), b3 (1, noise_dim)
    """
    # dtype prep: matmul operands bf16 (MXU-native), biases + layer-1 weight f32.
    w1 = params["w1"].astype(jnp.float32)
    b1 = params["b1"].astype(jnp.float32)
    w2 = params["w2"].astype(jnp.bfloat16)
    b2 = params["b2"].astype(jnp.float32)
    w3 = params["w3"]
    b3 = params["b3"]

    B, nd_in = noise.shape
    inner = w1.shape[1]
    nd_out = w3.shape[1]

    # Lane-dense output: pad final layer to a multiple of 128 output lanes so
    # the kernel emits unmasked full-lane stores; slice back afterwards.
    nd_pad = pl.cdiv(nd_out, 128) * 128
    w3p = jnp.zeros((inner, nd_pad), jnp.bfloat16).at[:, :nd_out].set(
        w3.astype(jnp.bfloat16))
    b3p = jnp.zeros((1, nd_pad), jnp.float32).at[:, :nd_out].set(
        b3.astype(jnp.float32))

    # Pad batch to a multiple of block_b; grid sized with pl.cdiv.
    b_pad = pl.cdiv(B, block_b) * block_b
    x = noise if b_pad == B else jnp.pad(noise, ((0, b_pad - B), (0, 0)))

    grid = (b_pad // block_b,)

    out = pl.pallas_call(
        _ffnn_kernel,
        out_shape=jax.ShapeDtypeStruct((b_pad, nd_pad), noise.dtype),
        grid_spec=pltpu.PrefetchScalarGridSpec(
            num_scalar_prefetch=0,
            grid=grid,
            in_specs=[
                pl.BlockSpec((block_b, nd_in), lambda i: (i, 0)),  # x tile
                _full_spec(w1.shape), _full_spec(b1.shape),
                _full_spec(w2.shape), _full_spec(b2.shape),
                _full_spec(w3p.shape), _full_spec(b3p.shape),
            ],
            out_specs=pl.BlockSpec((block_b, nd_pad), lambda i: (i, 0)),
        ),
        compiler_params=pltpu.CompilerParams(
            dimension_semantics=("parallel",),
        ),
    )(x, w1, b1, w2, b2, w3p, b3p)

    return out[:B, :nd_out]


def init_params(key, noise_dim=2, inner_dim=512, num_layers=4):
    """Deterministic init mimicking nn.Linear's U(-1/sqrt(fan_in), 1/sqrt(fan_in))."""
    if num_layers < 2:
        raise Exception("Need at least 2 layers for this to work...")
    # TODO(synk): the fused kernel is specialized to num_layers=4 (the default);
    # additional hidden layers would need extra (w, b) kernel args.
    assert num_layers == 4, "kernel is specialized to the default num_layers=4"

    def linear(k, fan_in, fan_out):
        kw, kb = jax.random.split(k)
        bound = 1.0 / jnp.sqrt(fan_in)
        w = jax.random.uniform(kw, (fan_in, fan_out), jnp.float32, -bound, bound)
        b = jax.random.uniform(kb, (1, fan_out), jnp.float32, -bound, bound)
        return w, b

    k1, k2, k3 = jax.random.split(key, 3)
    w1, b1 = linear(k1, noise_dim, inner_dim)
    w2, b2 = linear(k2, inner_dim, inner_dim)
    w3, b3 = linear(k3, inner_dim, noise_dim)
    return {"w1": w1, "b1": b1, "w2": w2, "b2": b2, "w3": w3, "b3": b3}


def _reference_forward(noise, p):
    h = jnp.maximum(noise @ p["w1"] + p["b1"], 0.0)
    h = jnp.maximum(h @ p["w2"] + p["b2"], 0.0)
    return h @ p["w3"] + p["b3"]


if __name__ == "__main__":
    key = jax.random.PRNGKey(0)
    k_param, k_noise = jax.random.split(key)

    # Small shapes, but >= 2 grid steps so both v7x TensorCores are exercised.
    NOISE_DIM, INNER_DIM, NUM_LAYERS, BATCH, BLOCK_B = 2, 128, 4, 256, 128

    params = init_params(k_param, NOISE_DIM, INNER_DIM, NUM_LAYERS)
    noise = jax.random.normal(k_noise, (BATCH, NOISE_DIM), jnp.float32)

    out = basic_ffnn_forward(noise, params, block_b=BLOCK_B)
    out = jax.block_until_ready(out)

    ref = _reference_forward(noise, params)
    assert out.shape == (BATCH, NOISE_DIM)
    # bf16 matmul operands (f32 accumulation) -> relaxed tolerance vs f32 ref.
    assert jnp.allclose(out, ref, atol=2e-2, rtol=2e-2), (
        float(jnp.max(jnp.abs(out - ref))))

    print("KERNEL_OK")
</pallas_src>

<mosaic_0001>
module attributes {stable_mosaic.version = 11 : i64} {
  func.func @_ffnn_kernel(%arg0: i32, %arg1: memref<128x2xf32, #tpu.memory_space<vmem>>, %arg2: memref<2x128xf32, #tpu.memory_space<vmem>>, %arg3: memref<1x128xf32, #tpu.memory_space<vmem>>, %arg4: memref<128x128xbf16, #tpu.memory_space<vmem>>, %arg5: memref<1x128xf32, #tpu.memory_space<vmem>>, %arg6: memref<128x128xbf16, #tpu.memory_space<vmem>>, %arg7: memref<1x128xf32, #tpu.memory_space<vmem>>, %arg8: memref<128x128xf32, #tpu.memory_space<vmem>>) attributes {dimension_semantics = [#tpu.dimension_semantics<parallel>], iteration_bounds = array<i64: 2>, scalar_prefetch = 0 : i64, scratch_operands = 0 : i64, tpu.core_type = #tpu.core_type<tc>, window_params = [{transform_indices = @transform_0, window_bounds = array<i64: 128, 2>}, {pipeline_mode = #tpu.pipeline_mode<synchronous>, transform_indices = @transform_1, window_bounds = array<i64: 2, 128>}, {pipeline_mode = #tpu.pipeline_mode<synchronous>, transform_indices = @transform_2, window_bounds = array<i64: 1, 128>}, {pipeline_mode = #tpu.pipeline_mode<synchronous>, transform_indices = @transform_3, window_bounds = array<i64: 128, 128>}, {pipeline_mode = #tpu.pipeline_mode<synchronous>, transform_indices = @transform_4, window_bounds = array<i64: 1, 128>}, {pipeline_mode = #tpu.pipeline_mode<synchronous>, transform_indices = @transform_5, window_bounds = array<i64: 128, 128>}, {pipeline_mode = #tpu.pipeline_mode<synchronous>, transform_indices = @transform_6, window_bounds = array<i64: 1, 128>}, {transform_indices = @transform_7, window_bounds = array<i64: 128, 128>}]} {
    %c0 = arith.constant 0 : index
    %c0_0 = arith.constant 0 : index
    %0 = vector.load %arg1[%c0, %c0_0] : memref<128x2xf32, #tpu.memory_space<vmem>>, vector<128x2xf32>
    %c0_1 = arith.constant 0 : index
    %c0_2 = arith.constant 0 : index
    %1 = vector.load %arg2[%c0_1, %c0_2] : memref<2x128xf32, #tpu.memory_space<vmem>>, vector<2x128xf32>
    %2 = vector.extract_strided_slice %0 {offsets = [0, 0], sizes = [128, 1], strides = [1, 1]} : vector<128x2xf32> to vector<128x1xf32>
    %3 = vector.extract_strided_slice %1 {offsets = [0, 0], sizes = [1, 128], strides = [1, 1]} : vector<2x128xf32> to vector<1x128xf32>
    %4 = vector.broadcast %2 : vector<128x1xf32> to vector<128x128xf32>
    %5 = vector.broadcast %3 : vector<1x128xf32> to vector<128x128xf32>
    %6 = arith.mulf %4, %5 : vector<128x128xf32>
    %7 = vector.extract_strided_slice %0 {offsets = [0, 1], sizes = [128, 1], strides = [1, 1]} : vector<128x2xf32> to vector<128x1xf32>
    %8 = vector.extract_strided_slice %1 {offsets = [1, 0], sizes = [1, 128], strides = [1, 1]} : vector<2x128xf32> to vector<1x128xf32>
    %9 = vector.broadcast %7 : vector<128x1xf32> to vector<128x128xf32>
    %10 = vector.broadcast %8 : vector<1x128xf32> to vector<128x128xf32>
    %11 = arith.mulf %9, %10 : vector<128x128xf32>
    %12 = arith.addf %6, %11 : vector<128x128xf32>
    %c0_3 = arith.constant 0 : index
    %c0_4 = arith.constant 0 : index
    %13 = vector.load %arg3[%c0_3, %c0_4] : memref<1x128xf32, #tpu.memory_space<vmem>>, vector<1x128xf32>
    %14 = vector.broadcast %13 : vector<1x128xf32> to vector<128x128xf32>
    %15 = arith.addf %12, %14 : vector<128x128xf32>
    %cst = arith.constant 0.000000e+00 : f32
    %16 = vector.broadcast %cst : f32 to vector<128x128xf32>
    %17 = arith.maximumf %15, %16 : vector<128x128xf32>
    %18 = arith.truncf %17 : vector<128x128xf32> to vector<128x128xbf16>
    %c0_5 = arith.constant 0 : index
    %c0_6 = arith.constant 0 : index
    %19 = vector.load %arg4[%c0_5, %c0_6] : memref<128x128xbf16, #tpu.memory_space<vmem>>, vector<128x128xbf16>
    %cst_7 = arith.constant dense<0.000000e+00> : vector<128x128xf32>
    %20 = tpu.matmul %18, %19, %cst_7 {dimension_numbers = #tpu.dot_dimension_numbers<[1], [0], [0], [1], [0, 0, 1, 1], [], []>} : vector<128x128xbf16>, vector<128x128xbf16>, vector<128x128xf32> -> vector<128x128xf32>
    %c0_8 = arith.constant 0 : index
    %c0_9 = arith.constant 0 : index
    %21 = vector.load %arg5[%c0_8, %c0_9] : memref<1x128xf32, #tpu.memory_space<vmem>>, vector<1x128xf32>
    %22 = vector.broadcast %21 : vector<1x128xf32> to vector<128x128xf32>
    %23 = arith.addf %20, %22 : vector<128x128xf32>
    %cst_10 = arith.constant 0.000000e+00 : f32
    %24 = vector.broadcast %cst_10 : f32 to vector<128x128xf32>
    %25 = arith.maximumf %23, %24 : vector<128x128xf32>
    %26 = arith.truncf %25 : vector<128x128xf32> to vector<128x128xbf16>
    %c0_11 = arith.constant 0 : index
    %c0_12 = arith.constant 0 : index
    %27 = vector.load %arg6[%c0_11, %c0_12] : memref<128x128xbf16, #tpu.memory_space<vmem>>, vector<128x128xbf16>
    %cst_13 = arith.constant dense<0.000000e+00> : vector<128x128xf32>
    %28 = tpu.matmul %26, %27, %cst_13 {dimension_numbers = #tpu.dot_dimension_numbers<[1], [0], [0], [1], [0, 0, 1, 1], [], []>} : vector<128x128xbf16>, vector<128x128xbf16>, vector<128x128xf32> -> vector<128x128xf32>
    %c0_14 = arith.constant 0 : index
    %c0_15 = arith.constant 0 : index
    %29 = vector.load %arg7[%c0_14, %c0_15] : memref<1x128xf32, #tpu.memory_space<vmem>>, vector<1x128xf32>
    %30 = vector.broadcast %29 : vector<1x128xf32> to vector<128x128xf32>
    %31 = arith.addf %28, %30 : vector<128x128xf32>
    %c0_16 = arith.constant 0 : index
    %c0_17 = arith.constant 0 : index
    %32 = vector.load %arg8[%c0_16, %c0_17] : memref<128x128xf32, #tpu.memory_space<vmem>>, vector<128x128xf32>
    tpu.vector_store %arg8[%c0_16, %c0_17], %31 {strides = array<i32>} : memref<128x128xf32, #tpu.memory_space<vmem>>, vector<128x128xf32>,
    return
  }
  func.func @transform_0(%arg0: i32) -> (i32, i32) {
    %c0_i32 = arith.constant 0 : i32
    %c0_i32_0 = arith.constant 0 : i32
    return %arg0, %c0_i32 : i32, i32
  }
  func.func @transform_1(%arg0: i32) -> (i32, i32) {
    %c0_i32 = arith.constant 0 : i32
    %c0_i32_0 = arith.constant 0 : i32
    %c0_i32_1 = arith.constant 0 : i32
    return %c0_i32, %c0_i32_0 : i32, i32
  }
  func.func @transform_2(%arg0: i32) -> (i32, i32) {
    %c0_i32 = arith.constant 0 : i32
    %c0_i32_0 = arith.constant 0 : i32
    %c0_i32_1 = arith.constant 0 : i32
    return %c0_i32, %c0_i32_0 : i32, i32
  }
  func.func @transform_3(%arg0: i32) -> (i32, i32) {
    %c0_i32 = arith.constant 0 : i32
    %c0_i32_0 = arith.constant 0 : i32
    %c0_i32_1 = arith.constant 0 : i32
    return %c0_i32, %c0_i32_0 : i32, i32
  }
  func.func @transform_4(%arg0: i32) -> (i32, i32) {
    %c0_i32 = arith.constant 0 : i32
    %c0_i32_0 = arith.constant 0 : i32
    %c0_i32_1 = arith.constant 0 : i32
    return %c0_i32, %c0_i32_0 : i32, i32
  }
  func.func @transform_5(%arg0: i32) -> (i32, i32) {
    %c0_i32 = arith.constant 0 : i32
    %c0_i32_0 = arith.constant 0 : i32
    %c0_i32_1 = arith.constant 0 : i32
    return %c0_i32, %c0_i32_0 : i32, i32
  }
  func.func @transform_6(%arg0: i32) -> (i32, i32) {
    %c0_i32 = arith.constant 0 : i32
    %c0_i32_0 = arith.constant 0 : i32
    %c0_i32_1 = arith.constant 0 : i32
    return %c0_i32, %c0_i32_0 : i32, i32
  }
  func.func @transform_7(%arg0: i32) -> (i32, i32) {
    %c0_i32 = arith.constant 0 : i32
    %c0_i32_0 = arith.constant 0 : i32
    return %arg0, %c0_i32 : i32, i32
  }
}

</mosaic_0001>

<bundles_post_ra>
// kernel: basic_ffnn_forward.1
= control target key start
LH: loop header
LB: loop body
LE: loop exit
PB: predicated region body
PF: predicated region fallthrough
CT: control target
= control target key end

     0   :  { %s1199_s24 = smov 0   ;;  %s1394_s0 = inlined_call_operand.vmem [shape: f32[256,2], index: 0, kind: input, shape index: {}]   ;;  %s1395_s1 = inlined_call_operand.vmem [shape: f32[2,128], index: 1, kind: input, shape index: {}]   ;;  %s1396_s2 = inlined_call_operand.vmem [shape: f32[1,128], index: 2, kind: input, shape index: {}]   ;;  %s1397_s3 = inlined_call_operand.vmem [shape: bf16[128,128], index: 3, kind: input, shape index: {}]   ;;  %s1398_s4 = inlined_call_operand.vmem [shape: f32[1,128], index: 4, kind: input, shape index: {}]   ;;  %s1399_s5 = inlined_call_operand.vmem [shape: bf16[128,128], index: 5, kind: input, shape index: {}]   ;;  %s1400_s6 = inlined_call_operand.vmem [shape: f32[1,128], index: 6, kind: input, shape index: {}]   ;;  %s1401_s7 = inlined_call_operand.vmem [shape: f32[256,128], index: 7, kind: output, shape index: {}]  }
   0x1 LB: > { %s979_s25 = sadd.s32 4294967295, %s1155_s24   ;;  %p983_p0 = scmp.ge.s32.totalorder %s1155_s24, 1  ;;  %s1155_s24 = sphi %s1199_s24, %s17_s24  }
   0x2   : > { %p238_p1 = scmp.lt.s32.totalorder %s1155_s24, 3 }
   0x4   : > { %p239_p2 = pnand %p983_p0, %p238_p1 }
   0x5   : > { %s984_s26 = sshll.u32 (!%p239_p2), %s979_s25, 4  ;;  %v1133_v0 = vld [vmem:[%s1397_s3] sm:$0xff] (!%p239_p2)   ;;  %v1157_v1 = vmov (!%p239_p2), 1   ;;  %v1134_v8 = vld [vmem:[%s1397_s3 + $0x8] sm:$0xff] (!%p239_p2)   ;;  %v1135_v9 = vld [vmem:[%s1397_s3 + $0x10] sm:$0xff] (!%p239_p2)   ;;  %v1158_v10 = vmov (!%p239_p2), 0   ;;  %v380_v32 = vlaneseq (!%p239_p2) }
   0x6   : > { %242 = sbr.rel (%p239_p2) target bundleno = 681 (0x2a9), region = 48  ;;  %1117 = vset.pattern.permute.xlu0 (!%p239_p2), %v1157_v1  ;;  %1115 = vset.pattern.permute.xlu1 (!%p239_p2), %v1157_v1  ;;  %p271_p3 = scmp.lt.s32.totalorder (!%p239_p2), %s984_s26, 31  ;;  %v1136_v11 = vld [vmem:[%s1397_s3 + $0x18] sm:$0xff] (!%p239_p2)   ;;  %v1137_v12 = vld [vmem:[%s1397_s3 + $0x20] sm:$0xff] (!%p239_p2)   ;;  %v1138_v14 = vld [vmem:[%s1397_s3 + $0x28] sm:$0xff] (!%p239_p2)  }
   0x7   : > { %1041 = vmatprep.subr.bf16.mxu0 (!%p239_p2), %v1133_v0  ;;  %v1139_v15 = vld [vmem:[%s1397_s3 + $0x30] sm:$0xff] (!%p239_p2)   ;;  %v1140_v17 = vld [vmem:[%s1397_s3 + $0x38] sm:$0xff] (!%p239_p2)   ;;  %v1141_v26 = vld [vmem:[%s1399_s5] sm:$0xff] (!%p239_p2)   ;;  %v381_v35 = vshrl.u32 (!%p239_p2), %v380_v32, 7 }
   0x8   : > { %1042 = vmatpush3.bf16.msra.mxu0 (!%p239_p2), %v1133_v0  ;;  %v1142_v27 = vld [vmem:[%s1399_s5 + $0x8] sm:$0xff] (!%p239_p2)   ;;  %1073 = vmatprep.subr.bf16.mxu1 (!%p239_p2), %v1141_v26  ;;  %v1143_v28 = vld [vmem:[%s1399_s5 + $0x10] sm:$0xff] (!%p239_p2)   ;;  %v1144_v29 = vld [vmem:[%s1399_s5 + $0x18] sm:$0xff] (!%p239_p2)  }
   0x9   : > { %1043 = vmatprep.subr.bf16.mxu0 (!%p239_p2), %v1134_v8  ;;  %1074 = vmatpush3.bf16.msra.mxu1 (!%p239_p2), %v1141_v26  ;;  %v1145_v30 = vld [vmem:[%s1399_s5 + $0x20] sm:$0xff] (!%p239_p2)   ;;  %v1146_v31 = vld [vmem:[%s1399_s5 + $0x28] sm:$0xff] (!%p239_p2)   ;;  %v466_v38 = vsub.s32 (!%p239_p2), 1, %v381_v35  ;;  %v382_v41 = vsub.s32 (!%p239_p2), 0, %v381_v35 }
   0xa   : > { %1075 = vmatprep.subr.bf16.mxu1 (!%p239_p2), %v1142_v27  ;;  %v299_v39 = vld [vmem:[%s1395_s1] sm:$0x3] (!%p239_p2) }
   0xb   : > { %v1298_v43 = vrot.slane (!%p239_p2), %v299_v39, %v466_v38  ;;  %v1300_v44 = vrot.slane (!%p239_p2), %v299_v39, %v382_v41  ;;  %v1308_v51 = vld [vmem:[%s1396_s2] ss:$0 sm:$0xff] (!%p239_p2) }
   0xc   : > { %1044 = vmatpush3.bf16.msra.mxu0 (!%p239_p2), %v1134_v8 }
   0xd   : > { %s1403_s26 = smov (!%p271_p3, %s984_s26), 31  ;;  %1045 = vmatprep.subr.bf16.mxu0 %v1135_v9  ;;  %1076 = vmatpush3.bf16.msra.mxu1 %v1142_v27 }
   0xe   : > { %s985_s29 = sshll.u32 %s1403_s26, 3  ;;  %1077 = vmatprep.subr.bf16.mxu1 %v1143_v28 }
   0xf   : > { %s1220_s9 = scalar_lea.vmem %s1394_s0, %s985_s29 }
  0x10   : > { %v285_v2 = vld [vmem:[%s1220_s9 + $0x10] sm:$0xff]  ;;  %v283_v3 = vld [vmem:[%s1220_s9] sm:$0xff]  ;;  %v284_v5 = vld [vmem:[%s1220_s9 + $0x8] sm:$0xff]  ;;  %1046 = vmatpush3.bf16.msra.mxu0 %v1135_v9 }
  0x11   : > { %409 = vperm.xlu0 %1117, %v285_v2   ;;  %401 = vperm.xlu1 %1115, %v283_v3   ;;  %v289_v4 = vld [vmem:[%s1220_s9 + $0x30] sm:$0xff]  ;;  %v286_v7 = vld [vmem:[%s1220_s9 + $0x18] sm:$0xff]  ;;  %v287_v13 = vld [vmem:[%s1220_s9 + $0x20] sm:$0xff] }
  0x12   : > { %v293_v6 = vld [vmem:[%s1220_s9 + $0x50] sm:$0xff]  ;;  %1047 = vmatprep.subr.bf16.mxu0 %v1136_v11  ;;  %v288_v16 = vld [vmem:[%s1220_s9 + $0x28] sm:$0xff]  ;;  %v290_v19 = vld [vmem:[%s1220_s9 + $0x38] sm:$0xff]  ;;  %1078 = vmatpush3.bf16.msra.mxu1 %v1143_v28 }
  0x13   : > { %v292_v18 = vld [vmem:[%s1220_s9 + $0x48] sm:$0xff]  ;;  %v291_v21 = vld [vmem:[%s1220_s9 + $0x40] sm:$0xff]  ;;  %v297_v22 = vld [vmem:[%s1220_s9 + $0x70] sm:$0xff]  ;;  %1079 = vmatprep.subr.bf16.mxu1 %v1144_v29 }
  0x14   : > { %1048 = vmatpush3.bf16.msra.mxu0 %v1136_v11  ;;  %v296_v20 = vld [vmem:[%s1220_s9 + $0x68] sm:$0xff]  ;;  %v294_v23 = vld [vmem:[%s1220_s9 + $0x58] sm:$0xff]  ;;  %v295_v24 = vld [vmem:[%s1220_s9 + $0x60] sm:$0xff] }
  0x15   : > { %425 = vperm.xlu0 %1117, %v289_v4   ;;  %405 = vperm.xlu1 %1115, %v284_v5   ;;  %v298_v25 = vld [vmem:[%s1220_s9 + $0x78] sm:$0xff]  ;;  %s1373_s9 = scalar_lea.vmem %s1401_s7, %s985_s29 }
  0x16   : > { %1049 = vmatprep.subr.bf16.mxu0 %v1137_v12  ;;  %1080 = vmatpush3.bf16.msra.mxu1 %v1144_v29 }
  0x17   : > { %1081 = vmatprep.subr.bf16.mxu1 %v1145_v30 }
  0x18   : > { %1050 = vmatpush3.bf16.msra.mxu0 %v1137_v12 }
  0x19   : > { %441 = vperm.xlu0 %1117, %v293_v6   ;;  %1116 = vset.pattern.permute.xlu1 %v1158_v10 }
  0x1a   : > { %317 = vperm.xlu1 %1116, %v286_v7   ;;  %1051 = vmatprep.subr.bf16.mxu0 %v1138_v14 }
  0x1b   : > { %1082 = vmatpush3.bf16.msra.mxu1 %v1145_v30 }
  0x1c   : > { %1052 = vmatpush3.bf16.msra.mxu0 %v1138_v14  ;;  %1083 = vmatprep.subr.bf16.mxu1 %v1146_v31 }
  0x1d   : > { %1126 = vset.pattern.permute.xlu0 %v1158_v10  ;;  %1053 = vmatprep.subr.bf16.mxu0 %v1139_v15 }
  0x1e   : > { %302 = vperm.xlu0 %1126, %v283_v3   ;;  %1118 = vset.pattern.permute.xlu1 %v1157_v1 }
  0x1f   : > { %413 = vperm.xlu1 %1118, %v286_v7   ;;  %1084 = vmatpush3.bf16.msra.mxu1 %v1146_v31 }
  0x20   : > { %1054 = vmatpush3.bf16.msra.mxu0 %v1139_v15 }
  0x21   : > { %1055 = vmatprep.subr.bf16.mxu0 %v1140_v17 }
  0x22   : > { %307 = vperm.xlu0 %1126, %v284_v5  }
  0x23   : > { %1119 = vset.pattern.permute.xlu1 %v1158_v10 }
  0x24   : > { %322 = vperm.xlu1 %1119, %v287_v13   ;;  %1056 = vmatpush3.bf16.msra.mxu0 %v1140_v17 }
  0x26   : > { %312 = vperm.xlu0 %1126, %v285_v2  }
  0x28   : > { %1120 = vset.pattern.permute.xlu1 %v1157_v1 }
  0x29   : > { %417 = vperm.xlu1 %1120, %v287_v13  }
  0x2a   : > { %327 = vperm.xlu0 %1126, %v288_v16  }
  0x2d   : > { %421 = vperm.xlu1 %1120, %v288_v16  }
  0x2e   : > { %332 = vperm.xlu0 %1126, %v289_v4  }
  0x31   : > { %1121 = vset.pattern.permute.xlu1 %v1158_v10 }
  0x32   : > { %347 = vperm.xlu0 %1126, %v292_v18   ;;  %337 = vperm.xlu1 %1121, %v290_v19  }
  0x36   : > { %352 = vperm.xlu0 %1126, %v293_v6   ;;  %1122 = vset.pattern.permute.xlu1 %v1157_v1 }
  0x37   : > { %429 = vperm.xlu1 %1122, %v290_v19  }
  0x3a   : > { %367 = vperm.xlu0 %1126, %v296_v20  }
  0x3b   : > { %1123 = vset.pattern.permute.xlu1 %v1158_v10 }
  0x3c   : > { %342 = vperm.xlu1 %1123, %v291_v21  }
  0x3e   : > { %372 = vperm.xlu0 %1126, %v297_v22  }
  0x40   : > { %1124 = vset.pattern.permute.xlu1 %v1157_v1 }
  0x41   : > { %433 = vperm.xlu1 %1124, %v291_v21  }
  0x42   : > { %1131 = vset.pattern.permute.xlu0 %v1157_v1 }
  0x43   : > { %457 = vperm.xlu0 %1131, %v297_v22  }
  0x45   : > { %437 = vperm.xlu1 %1124, %v292_v18  }
  0x49   : > { %1125 = vset.pattern.permute.xlu1 %v1158_v10 }
  0x4a   : > { %357 = vperm.xlu1 %1125, %v294_v23  }
  0x4e   : > { %1127 = vset.pattern.permute.xlu1 %v1157_v1 }
  0x4f   : > { %445 = vperm.xlu1 %1127, %v294_v23  }
  0x53   : > { %1128 = vset.pattern.permute.xlu1 %v1158_v10 }
  0x54   : > { %362 = vperm.xlu1 %1128, %v295_v24  }
  0x58   : > { %1129 = vset.pattern.permute.xlu1 %v1157_v1 }
  0x59   : > { %449 = vperm.xlu1 %1129, %v295_v24  }
  0x5d   : > { %453 = vperm.xlu1 %1129, %v296_v20  }
  0x61   : > { %1130 = vset.pattern.permute.xlu1 %v1158_v10 }
  0x62   : > { %377 = vperm.xlu1 %1130, %v298_v25  }
  0x66   : > { %1132 = vset.pattern.permute.xlu1 %v1157_v1 }
  0x67   : > { %461 = vperm.xlu1 %1132, %v298_v25  }
  0x90   : > { %v402_v33 = vpop.permute.xlu1 %401  ;;  %v410_v34 = vpop.permute.xlu0 %409 }
  0x91   : > { %v468_v46 = vmul.f32 %v1298_v43, %v402_v33  ;;  %v470_v57 = vmul.f32 %v1298_v43, %v410_v34 }
  0x94   : > { %v406_v36 = vpop.permute.xlu1 %405  ;;  %v426_v37 = vpop.permute.xlu0 %425 }
  0x95   : > { %v469_v53 = vmul.f32 %v1298_v43, %v406_v36  ;;  %v474_v20 = vmul.f32 %v1298_v43, %v426_v37 }
  0x98   : > { %v1296_v40 = vpop.permute.xlu0 %441 }
  0x99   : > { %v318_v42 = vpop.permute.xlu1 %317 }
  0x9a   : > { %v387_v54 = vmul.f32 %v1300_v44, %v318_v42 }
  0x9d   : > { %v303_v45 = vpop.permute.xlu0 %302 }
  0x9e   : > { %v384_v47 = vmul.f32 %v1300_v44, %v303_v45  ;;  %v414_v48 = vpop.permute.xlu1 %413 }
  0x9f   : > { %v471_v50 = vmul.f32 %v1298_v43, %v414_v48 }
  0xa0   : > { %v484_v49 = vadd.f32 %v468_v46, %v384_v47 }
  0xa1   : > { %v308_v52 = vpop.permute.xlu0 %307  ;;  %v487_v58 = vadd.f32 %v471_v50, %v387_v54 }
  0xa2   : > { %v385_v55 = vmul.f32 %v1300_v44, %v308_v52  ;;  %v507_v60 = vadd.f32 %v1308_v51, %v484_v49 }
  0xa3   : > { %v323_v56 = vpop.permute.xlu1 %322  ;;  %v510_v0 = vadd.f32 %v1308_v51, %v487_v58 }
  0xa4   : > { %v485_v59 = vadd.f32 %v469_v53, %v385_v55  ;;  %v523_v3 = vmax.f32 %v507_v60, 0.0  ;;  %v388_v5 = vmul.f32 %v1300_v44, %v323_v56  ;;  %v478_v53 = vmul.f32 %v1298_v43, %v1296_v40 }
  0xa5   : > { %v313_v61 = vpop.permute.xlu0 %312  ;;  %v526_v12 = vmax.f32 %v510_v0, 0.0 }
  0xa6   : > { %v386_v62 = vmul.f32 %v1300_v44, %v313_v61  ;;  %v508_v63 = vadd.f32 %v1308_v51, %v485_v59 }
  0xa8   : > { %v486_v1 = vadd.f32 %v470_v57, %v386_v62  ;;  %v418_v2 = vpop.permute.xlu1 %417  ;;  %v524_v4 = vmax.f32 %v508_v63, 0.0 }
  0xa9   : > { %v472_v6 = vmul.f32 %v1298_v43, %v418_v2  ;;  %v328_v8 = vpop.permute.xlu0 %327 }
  0xaa   : > { %v509_v7 = vadd.f32 %v1308_v51, %v486_v1  ;;  %v539_v9 = vpack.c.bf16 %v524_v4, %v523_v3  ;;  %v389_v11 = vmul.f32 %v1300_v44, %v328_v8 }
  0xab   : > { %v488_v10 = vadd.f32 %v472_v6, %v388_v5 }
  0xac   : > { %v525_v13 = vmax.f32 %v509_v7, 0.0  ;;  %1057 = vmatprep.mubr.bf16.mxu0 %v539_v9  ;;  %v422_v14 = vpop.permute.xlu1 %421 }
  0xad   : > { %v473_v15 = vmul.f32 %v1298_v43, %v422_v14  ;;  %v511_v17 = vadd.f32 %v1308_v51, %v488_v10  ;;  %v333_v19 = vpop.permute.xlu0 %332 }
  0xae   : > { %v540_v16 = vpack.c.bf16 %v526_v12, %v525_v13  ;;  %v390_v22 = vmul.f32 %v1300_v44, %v333_v19 }
  0xaf   : > { %v489_v18 = vadd.f32 %v473_v15, %v389_v11  ;;  %v527_v24 = vmax.f32 %v511_v17, 0.0 }
  0xb0   : > { %1058 = vmatmul.mubr.bf16.vlgmr.msra.gmra.mrb[0].mxu0 %v540_v16  ;;  %v490_v26 = vadd.f32 %v474_v20, %v390_v22 }
  0xb1   : > { %v512_v21 = vadd.f32 %v1308_v51, %v489_v18  ;;  %v338_v23 = vpop.permute.xlu1 %337  ;;  %v348_v38 = vpop.permute.xlu0 %347 }
  0xb2   : > { %v391_v29 = vmul.f32 %v1300_v44, %v338_v23  ;;  %v513_v31 = vadd.f32 %v1308_v51, %v490_v26  ;;  %v393_v47 = vmul.f32 %v1300_v44, %v348_v38 }
  0xb3   : > { %v528_v25 = vmax.f32 %v512_v21, 0.0 }
  0xb4   : > { %v529_v35 = vmax.f32 %v513_v31, 0.0 }
  0xb5   : > { %v541_v27 = vpack.c.bf16 %v528_v25, %v527_v24  ;;  %v353_v49 = vpop.permute.xlu0 %352 }
  0xb6   : > { %v430_v28 = vpop.permute.xlu1 %429  ;;  %v394_v54 = vmul.f32 %v1300_v44, %v353_v49 }
  0xb7   : > { %v475_v30 = vmul.f32 %v1298_v43, %v430_v28  ;;  %1061 = vmatprep.mubr.bf16.mxu0 %v541_v27 }
  0xb8   : > { %v494_v59 = vadd.f32 %v478_v53, %v394_v54 }
  0xb9   : > { %v491_v32 = vadd.f32 %v475_v30, %v391_v29  ;;  %v368_v2 = vpop.permute.xlu0 %367 }
  0xba   : > { %v517_v0 = vadd.f32 %v1308_v51, %v494_v59  ;;  %v397_v13 = vmul.f32 %v1300_v44, %v368_v2 }
  0xbb   : > { %v514_v33 = vadd.f32 %v1308_v51, %v491_v32  ;;  %v343_v34 = vpop.permute.xlu1 %342 }
  0xbc   : > { %v392_v41 = vmul.f32 %v1300_v44, %v343_v34  ;;  %v533_v4 = vmax.f32 %v517_v0, 0.0 }
  0xbd   : > { %v530_v36 = vmax.f32 %v514_v33, 0.0  ;;  %v373_v7 = vpop.permute.xlu0 %372 }
  0xbe   : > { %v398_v18 = vmul.f32 %v1300_v44, %v373_v7 }
  0xbf   : > { %v542_v37 = vpack.c.bf16 %v530_v36, %v529_v35  ;;  %v1147_v35 = vld [vmem:[%s1399_s5 + $0x30] sm:$0xff]  }
  0xc0   : > { %v434_v39 = vpop.permute.xlu1 %433  ;;  %1085 = vmatprep.subr.bf16.mxu1 %v1147_v35 }
  0xc1   : > { %v476_v42 = vmul.f32 %v1298_v43, %v434_v39  ;;  %1062 = vmatmul.mubr.bf16.gmra.mrb[4].mxu0 %v542_v37  ;;  %1086 = vmatpush3.bf16.msra.mxu1 %v1147_v35 }
  0xc2   : > { %v458_v15 = vpop.permute.xlu0 %457 }
  0xc3   : > { %v492_v45 = vadd.f32 %v476_v42, %v392_v41  ;;  %v482_v19 = vmul.f32 %v1298_v43, %v458_v15 }
  0xc4   : > { %v438_v46 = vpop.permute.xlu1 %437 }
  0xc5   : > { %v477_v48 = vmul.f32 %v1298_v43, %v438_v46  ;;  %v515_v50 = vadd.f32 %v1308_v51, %v492_v45  ;;  %v498_v24 = vadd.f32 %v482_v19, %v398_v18 }
  0xc7   : > { %v493_v52 = vadd.f32 %v477_v48, %v393_v47  ;;  %v531_v57 = vmax.f32 %v515_v50, 0.0  ;;  %v521_v29 = vadd.f32 %v1308_v51, %v498_v24 }
  0xc9   : > { %v516_v55 = vadd.f32 %v1308_v51, %v493_v52  ;;  %v358_v56 = vpop.permute.xlu1 %357  ;;  %v537_v32 = vmax.f32 %v521_v29, 0.0 }
  0xca   : > { %v395_v62 = vmul.f32 %v1300_v44, %v358_v56 }
  0xcb   : > { %v532_v58 = vmax.f32 %v516_v55, 0.0 }
  0xcd   : > { %v543_v60 = vpack.c.bf16 %v532_v58, %v531_v57 }
  0xce   : > { %v446_v61 = vpop.permute.xlu1 %445 }
  0xcf   : > { %v479_v63 = vmul.f32 %v1298_v43, %v446_v61  ;;  %1065 = vmatprep.mubr.bf16.mxu0 %v543_v60 }
  0xd1   : > { %v495_v1 = vadd.f32 %v479_v63, %v395_v62 }
  0xd3   : > { %v518_v40 = vadd.f32 %v1308_v51, %v495_v1  ;;  %v363_v3 = vpop.permute.xlu1 %362 }
  0xd4   : > { %v396_v9 = vmul.f32 %v1300_v44, %v363_v3 }
  0xd5   : > { %v534_v5 = vmax.f32 %v518_v40, 0.0 }
  0xd7   : > { %v544_v6 = vpack.c.bf16 %v534_v5, %v533_v4 }
  0xd8   : > { %v450_v8 = vpop.permute.xlu1 %449 }
  0xd9   : > { %v480_v10 = vmul.f32 %v1298_v43, %v450_v8  ;;  %1066 = vmatmul.mubr.bf16.gmra.mrb[8].mxu0 %v544_v6 }
  0xdb   : > { %v496_v11 = vadd.f32 %v480_v10, %v396_v9 }
  0xdc   : > { %v454_v12 = vpop.permute.xlu1 %453 }
  0xdd   : > { %v481_v14 = vmul.f32 %v1298_v43, %v454_v12  ;;  %v519_v16 = vadd.f32 %v1308_v51, %v496_v11 }
  0xdf   : > { %v497_v17 = vadd.f32 %v481_v14, %v397_v13  ;;  %v535_v22 = vmax.f32 %v519_v16, 0.0 }
  0xe1   : > { %v520_v20 = vadd.f32 %v1308_v51, %v497_v17  ;;  %v378_v21 = vpop.permute.xlu1 %377 }
  0xe2   : > { %v399_v27 = vmul.f32 %v1300_v44, %v378_v21  ;;  %v989_v44 = vld [vmem:[%s1398_s4] ss:$0 sm:$0xff] }
  0xe3   : > { %v536_v23 = vmax.f32 %v520_v20, 0.0 }
  0xe5   : > { %v545_v25 = vpack.c.bf16 %v536_v23, %v535_v22 }
  0xe6   : > { %v462_v26 = vpop.permute.xlu1 %461 }
  0xe7   : > { %v483_v28 = vmul.f32 %v1298_v43, %v462_v26  ;;  %1069 = vmatprep.mubr.bf16.mxu0 %v545_v25  ;;  %v1148_v43 = vld [vmem:[%s1399_s5 + $0x38] sm:$0xff]  }
  0xe8   : > { %1087 = vmatprep.subr.bf16.mxu1 %v1148_v43 }
  0xe9   : > { %v499_v30 = vadd.f32 %v483_v28, %v399_v27  ;;  %1088 = vmatpush3.bf16.msra.mxu1 %v1148_v43 }
  0xeb   : > { %v522_v31 = vadd.f32 %v1308_v51, %v499_v30  ;;  %v998_v30 = vld [vmem:[%s1400_s6] ss:$0 sm:$0xff] }
  0xed   : > { %v538_v33 = vmax.f32 %v522_v31, 0.0 }
  0xef   : > { %v546_v34 = vpack.c.bf16 %v538_v33, %v537_v32 }
  0xf1   : > { %1070 = vmatmul.mubr.bf16.gmra.mrb[12].mxu0 %v546_v34 }
 0x183   : > { %v1059_v51 = vpop.f32.mrb[0].mxu0 }
 0x184   : > { %v661_v36 = vadd.f32 %v1059_v51, %v989_v44  ;;  %v652_v37 = vpop.f32.mrb[1].mxu0 }
 0x185   : > { %v653_v38 = vadd.f32 %v989_v44, %v652_v37  ;;  %v1060_v39 = vpop.f32.mrb[2].mxu0 }
 0x186   : > { %v664_v41 = vadd.f32 %v1060_v39, %v989_v44  ;;  %v655_v42 = vpop.f32.mrb[3].mxu0  ;;  %v717_v46 = vmax.f32 %v661_v36, 0.0 }
 0x187   : > { %v656_v45 = vadd.f32 %v989_v44, %v655_v42  ;;  %v715_v48 = vmax.f32 %v653_v38, 0.0 }
 0x188   : > { %v718_v47 = vmax.f32 %v664_v41, 0.0 }
 0x189   : > { %v716_v49 = vmax.f32 %v656_v45, 0.0 }
 0x18a   : > { %v732_v50 = vpack.c.bf16 %v718_v47, %v717_v46 }
 0x18b   : > { %v731_v52 = vpack.c.bf16 %v716_v49, %v715_v48 }
 0x18d   : > { %1089 = vmatprep.mubr.bf16.mxu1 %v731_v52 }
 0x18e   : > { %1090 = vmatmul.mubr.bf16.vlgmr.msra.gmra.mrb[0].mxu1 %v732_v50 }
 0x194   : > { %v1063_v53 = vpop.f32.mrb[4].mxu0 }
 0x195   : > { %v677_v54 = vadd.f32 %v1063_v53, %v989_v44  ;;  %v668_v55 = vpop.f32.mrb[5].mxu0 }
 0x196   : > { %v669_v56 = vadd.f32 %v989_v44, %v668_v55  ;;  %v1064_v57 = vpop.f32.mrb[6].mxu0 }
 0x197   : > { %v680_v58 = vadd.f32 %v1064_v57, %v989_v44  ;;  %v671_v59 = vpop.f32.mrb[7].mxu0  ;;  %v721_v61 = vmax.f32 %v677_v54, 0.0 }
 0x198   : > { %v672_v60 = vadd.f32 %v989_v44, %v671_v59  ;;  %v719_v63 = vmax.f32 %v669_v56, 0.0 }
 0x199   : > { %v722_v62 = vmax.f32 %v680_v58, 0.0 }
 0x19a   : > { %v720_v0 = vmax.f32 %v672_v60, 0.0 }
 0x19b   : > { %v734_v1 = vpack.c.bf16 %v722_v62, %v721_v61 }
 0x19c   : > { %v733_v2 = vpack.c.bf16 %v720_v0, %v719_v63 }
 0x19e   : > { %1093 = vmatprep.mubr.bf16.mxu1 %v733_v2 }
 0x19f   : > { %1094 = vmatmul.mubr.bf16.gmra.mrb[4].mxu1 %v734_v1 }
 0x1ac   : > { %v1067_v40 = vpop.f32.mrb[8].mxu0 }
 0x1ad   : > { %v693_v3 = vadd.f32 %v1067_v40, %v989_v44  ;;  %v684_v4 = vpop.f32.mrb[9].mxu0 }
 0x1ae   : > { %v685_v5 = vadd.f32 %v989_v44, %v684_v4  ;;  %v1068_v6 = vpop.f32.mrb[10].mxu0 }
 0x1af   : > { %v696_v7 = vadd.f32 %v1068_v6, %v989_v44  ;;  %v687_v8 = vpop.f32.mrb[11].mxu0  ;;  %v725_v10 = vmax.f32 %v693_v3, 0.0 }
 0x1b0   : > { %v688_v9 = vadd.f32 %v989_v44, %v687_v8  ;;  %v723_v12 = vmax.f32 %v685_v5, 0.0 }
 0x1b1   : > { %v726_v11 = vmax.f32 %v696_v7, 0.0 }
 0x1b2   : > { %v724_v13 = vmax.f32 %v688_v9, 0.0 }
 0x1b3   : > { %v736_v14 = vpack.c.bf16 %v726_v11, %v725_v10 }
 0x1b4   : > { %v735_v15 = vpack.c.bf16 %v724_v13, %v723_v12 }
 0x1b6   : > { %1097 = vmatprep.mubr.bf16.mxu1 %v735_v15 }
 0x1b7   : > { %1098 = vmatmul.mubr.bf16.gmra.mrb[8].mxu1 %v736_v14 }
 0x1c4   : > { %v1071_v16 = vpop.f32.mrb[12].mxu0 }
 0x1c5   : > { %v709_v17 = vadd.f32 %v1071_v16, %v989_v44  ;;  %v700_v18 = vpop.f32.mrb[13].mxu0 }
 0x1c6   : > { %v701_v19 = vadd.f32 %v989_v44, %v700_v18  ;;  %v1072_v20 = vpop.f32.mrb[14].mxu0 }
 0x1c7   : > { %v712_v21 = vadd.f32 %v1072_v20, %v989_v44  ;;  %v703_v22 = vpop.f32.mrb[15].mxu0  ;;  %v729_v24 = vmax.f32 %v709_v17, 0.0 }
 0x1c8   : > { %v704_v23 = vadd.f32 %v989_v44, %v703_v22  ;;  %v727_v26 = vmax.f32 %v701_v19, 0.0 }
 0x1c9   : > { %v730_v25 = vmax.f32 %v712_v21, 0.0 }
 0x1ca   : > { %v728_v27 = vmax.f32 %v704_v23, 0.0 }
 0x1cb   : > { %v738_v28 = vpack.c.bf16 %v730_v25, %v729_v24 }
 0x1cc   : > { %v737_v29 = vpack.c.bf16 %v728_v27, %v727_v26 }
 0x1ce   : > { %1101 = vmatprep.mubr.bf16.mxu1 %v737_v29 }
 0x1cf   : > { %1102 = vmatmul.mubr.bf16.gmra.mrb[12].mxu1 %v738_v28 }
 0x261   : > { %v1091_v31 = vpop.f32.mrb[0].mxu1 }
 0x262   : > { %v853_v32 = vadd.f32 %v1091_v31, %v998_v30  ;;  %v844_v33 = vpop.f32.mrb[1].mxu1 }
 0x263   : > { %v845_v34 = vadd.f32 %v998_v30, %v844_v33  ;;  %v1092_v35 = vpop.f32.mrb[2].mxu1 }
 0x264   : > { %909 = vst [vmem:[%s1373_s9 + $0x10] sm:$0xff] %v853_v32  ;;  %v856_v43 = vadd.f32 %v1092_v35, %v998_v30  ;;  %v847_v44 = vpop.f32.mrb[3].mxu1 }
 0x265   : > { %907 = vst [vmem:[%s1373_s9] sm:$0xff] %v845_v34  ;;  %v848_v51 = vadd.f32 %v998_v30, %v847_v44 }
 0x266   : > { %910 = vst [vmem:[%s1373_s9 + $0x18] sm:$0xff] %v856_v43 }
 0x267   : > { %908 = vst [vmem:[%s1373_s9 + $0x8] sm:$0xff] %v848_v51 }
 0x272   : > { %v1095_v36 = vpop.f32.mrb[4].mxu1 }
 0x273   : > { %v869_v37 = vadd.f32 %v1095_v36, %v998_v30  ;;  %v860_v38 = vpop.f32.mrb[5].mxu1 }
 0x274   : > { %v861_v39 = vadd.f32 %v998_v30, %v860_v38  ;;  %v1096_v41 = vpop.f32.mrb[6].mxu1 }
 0x275   : > { %913 = vst [vmem:[%s1373_s9 + $0x30] sm:$0xff] %v869_v37  ;;  %v872_v42 = vadd.f32 %v1096_v41, %v998_v30  ;;  %v863_v45 = vpop.f32.mrb[7].mxu1 }
 0x276   : > { %911 = vst [vmem:[%s1373_s9 + $0x20] sm:$0xff] %v861_v39  ;;  %v864_v46 = vadd.f32 %v998_v30, %v863_v45 }
 0x277   : > { %914 = vst [vmem:[%s1373_s9 + $0x38] sm:$0xff] %v872_v42 }
 0x278   : > { %912 = vst [vmem:[%s1373_s9 + $0x28] sm:$0xff] %v864_v46 }
 0x28a   : > { %v1099_v47 = vpop.f32.mrb[8].mxu1 }
 0x28b   : > { %v885_v48 = vadd.f32 %v1099_v47, %v998_v30  ;;  %v876_v49 = vpop.f32.mrb[9].mxu1 }
 0x28c   : > { %v877_v50 = vadd.f32 %v998_v30, %v876_v49  ;;  %v1100_v52 = vpop.f32.mrb[10].mxu1 }
 0x28d   : > { %917 = vst [vmem:[%s1373_s9 + $0x50] sm:$0xff] %v885_v48  ;;  %v888_v53 = vadd.f32 %v1100_v52, %v998_v30  ;;  %v879_v54 = vpop.f32.mrb[11].mxu1 }
 0x28e   : > { %915 = vst [vmem:[%s1373_s9 + $0x40] sm:$0xff] %v877_v50  ;;  %v880_v55 = vadd.f32 %v998_v30, %v879_v54 }
 0x28f   : > { %918 = vst [vmem:[%s1373_s9 + $0x58] sm:$0xff] %v888_v53 }
 0x290   : > { %916 = vst [vmem:[%s1373_s9 + $0x48] sm:$0xff] %v880_v55 }
 0x2a2   : > { %v1103_v56 = vpop.f32.mrb[12].mxu1 }
 0x2a3   : > { %v901_v57 = vadd.f32 %v1103_v56, %v998_v30  ;;  %v892_v58 = vpop.f32.mrb[13].mxu1 }
 0x2a4   : > { %v893_v59 = vadd.f32 %v998_v30, %v892_v58  ;;  %v1104_v60 = vpop.f32.mrb[14].mxu1 }
 0x2a5   : > { %921 = vst [vmem:[%s1373_s9 + $0x70] sm:$0xff] %v901_v57  ;;  %v904_v61 = vadd.f32 %v1104_v60, %v998_v30  ;;  %v895_v62 = vpop.f32.mrb[15].mxu1 }
 0x2a6   : > { %919 = vst [vmem:[%s1373_s9 + $0x60] sm:$0xff] %v893_v59  ;;  %v896_v63 = vadd.f32 %v998_v30, %v895_v62 }
 0x2a7   : > { %922 = vst [vmem:[%s1373_s9 + $0x78] sm:$0xff] %v904_v61 }
 0x2a8   : > { %920 = vst [vmem:[%s1373_s9 + $0x68] sm:$0xff] %v896_v63 }
 0x2a9 PF: > { %s17_s24 = sadd.s32 1, %s1155_s24  }
 0x2aa   : > { %p14_p4 = scmp.ge.s32.totalorder %s17_s24, 4  }
 0x2ac   :  { %16 = sbr.rel (!%p14_p4) target bundleno = 1 (0x1), region = 78 }

</bundles_post_ra>
